<compile_context>
chip_gen: v7x
topology: tpu7x:2x2x1
jax: 0.10.0
libtpu: 0.0.40
codegen_flags: <defaults>
</compile_context>

<pallas_src>
import jax
import jax.numpy as jnp
from jax.experimental import pallas as pl
from jax.experimental.pallas import tpu as pltpu


def mlp_kernel(obs_ref, w1_ref, b1_ref, w2_ref, b2_ref, w3_ref, b3_ref, out_ref):
    # Layer 1: Linear + ReLU (f32 accumulation on the MXU).
    h1 = jnp.dot(obs_ref[...], w1_ref[...], preferred_element_type=jnp.float32)
    h1 = jnp.maximum(h1 + b1_ref[...], 0.0)
    # Layer 2: Linear + ReLU.  (If weights are bf16, jnp promotes to f32.)
    h2 = jnp.dot(h1, w2_ref[...], preferred_element_type=jnp.float32)
    h2 = jnp.maximum(h2 + b2_ref[...], 0.0)
    # Layer 3: Linear + Tanh (tanh runs on the EUP slot).
    h3 = jnp.dot(h2, w3_ref[...], preferred_element_type=jnp.float32)
    out_ref[...] = jnp.tanh(h3 + b3_ref[...]).astype(out_ref.dtype)


def _round_up(x, m):
    return pl.cdiv(x, m) * m


def critic_forward(obs, params, *, tile_b=1024, use_bf16=False):
    """obs: (B, in_dim) float32. params: dict of w1,b1,w2,b2,w3,b3 (unpadded).

    tile_b: batch tile for large batches (sweep 512/1024/2048 per chip).
    use_bf16: store obs + weights as bf16 (f32 accumulation kept); ~2x less
              HBM read on the mem-bound path, not bit-exact vs f32 reference.
    """
    B, in_dim = obs.shape
    hidden = params["w1"].shape[1]
    out_dim = params["w3"].shape[1]

    in_dtype = jnp.bfloat16 if use_bf16 else jnp.float32
    obs_c = obs.astype(in_dtype)
    w1 = params["w1"].astype(in_dtype)
    w2 = params["w2"].astype(in_dtype)
    w3 = params["w3"].astype(in_dtype)
    # Biases are tiny; keep them f32 so the add happens in f32.
    b1, b2, b3 = params["b1"], params["b2"], params["b3"]

    # Batch tile choice:
    #  * big B  -> tile_b (grid >= 3 tiles, ragged last block masked by Pallas)
    #  * medium -> split into exactly 2 tiles so both v7x TensorCores get work
    #  * tiny   -> single full-dim tile (always legal: block dim == array dim)
    sub = 16 if use_bf16 else 8  # sublane granularity for the packed dtype
    if B <= 2 * tile_b:
        tile_b = max(sub, _round_up(pl.cdiv(B, 2), sub))
    if tile_b > B:
        tile_b = B
    grid = (pl.cdiv(B, tile_b),)

    # Weights/biases: full-array block, constant index_map -> DMA'd once and
    # kept VMEM-resident across all batch tiles.
    def resident(arr):
        return pl.BlockSpec(arr.shape, lambda i: (0, 0))

    bytes_in = 2 if use_bf16 else 4
    cost = pl.CostEstimate(
        flops=2 * B * (in_dim * hidden + hidden * hidden + hidden * out_dim),
        transcendentals=B * out_dim,
        bytes_accessed=(bytes_in * (B * in_dim + in_dim * hidden
                                    + hidden * hidden + hidden * out_dim)
                        + 4 * (2 * hidden + out_dim + B * out_dim)),
    )

    # TODO(synk): on v7x, sweep dimension_semantics=(pltpu.CORE_PARALLEL,) to
    # force the batch grid across both TensorCores; "parallel" kept here for
    # portability across v5e/v6e/v7x.
    out = pl.pallas_call(
        mlp_kernel,
        out_shape=jax.ShapeDtypeStruct((B, out_dim), jnp.float32),
        grid=grid,
        in_specs=[
            # obs: tiled on batch only; last dim = full in_dim (lane rule OK).
            pl.BlockSpec((tile_b, in_dim), lambda i: (i, 0)),
            resident(w1), resident(b1),
            resident(w2), resident(b2),
            resident(w3), resident(b3),
        ],
        out_specs=pl.BlockSpec((tile_b, out_dim), lambda i: (i, 0)),
        compiler_params=pltpu.CompilerParams(
            dimension_semantics=("parallel",)),
        cost_estimate=cost,
    )(obs_c, w1, b1, w2, b2, w3, b3)

    return out


def init_params(key, in_dim, out_dim, hidden=64):
    """PyTorch-Linear-style uniform(+/- 1/sqrt(fan_in)) init; weights stored
    as (in_features, out_features)."""
    ks = jax.random.split(key, 6)

    def linear(kw, kb, fan_in, fan_out):
        bound = 1.0 / jnp.sqrt(jnp.float32(fan_in))
        w = jax.random.uniform(kw, (fan_in, fan_out), jnp.float32, -bound, bound)
        b = jax.random.uniform(kb, (1, fan_out), jnp.float32, -bound, bound)
        return w, b

    w1, b1 = linear(ks[0], ks[1], in_dim, hidden)
    w2, b2 = linear(ks[2], ks[3], hidden, hidden)
    w3, b3 = linear(ks[4], ks[5], hidden, out_dim)
    return {"w1": w1, "b1": b1, "w2": w2, "b2": b2, "w3": w3, "b3": b3}


def reference_forward(obs, p):
    h1 = jnp.maximum(obs @ p["w1"] + p["b1"], 0.0)
    h2 = jnp.maximum(h1 @ p["w2"] + p["b2"], 0.0)
    return jnp.tanh(h2 @ p["w3"] + p["b3"])


if __name__ == "__main__":
    key = jax.random.PRNGKey(0)
    k_obs, k_params, k_obs2, k_obs3 = jax.random.split(key, 4)

    in_dim, out_dim = 32, 4
    params = init_params(k_params, in_dim, out_dim)

    # Small batch (single full-dim tile path).
    batch = 8
    obs = jax.random.normal(k_obs, (batch, in_dim), jnp.float32)
    out = jax.block_until_ready(critic_forward(obs, params))
    ref = reference_forward(obs, params)
    assert out.shape == (batch, out_dim)
    assert jnp.allclose(out, ref, atol=1e-5, rtol=1e-5), "mismatch vs reference (B=8)"

    # Medium batch: split into 2 tiles with a ragged (masked) last block.
    batch2 = 300
    obs2 = jax.random.normal(k_obs2, (batch2, in_dim), jnp.float32)
    out2 = jax.block_until_ready(critic_forward(obs2, params))
    ref2 = reference_forward(obs2, params)
    assert out2.shape == (batch2, out_dim)
    assert jnp.allclose(out2, ref2, atol=1e-5, rtol=1e-5), "mismatch vs reference (B=300)"

    # Optional bf16 storage path (bandwidth optimization); f32 accumulation,
    # so only loose agreement with the f32 reference is expected.
    batch3 = 1024
    obs3 = jax.random.normal(k_obs3, (batch3, in_dim), jnp.float32)
    out3 = jax.block_until_ready(critic_forward(obs3, params, use_bf16=True))
    ref3 = reference_forward(obs3, params)
    assert out3.shape == (batch3, out_dim)
    assert jnp.allclose(out3, ref3, atol=5e-2, rtol=5e-2), "mismatch vs reference (bf16)"

    print("KERNEL_OK")
</pallas_src>

<mosaic_0001>
module attributes {stable_mosaic.version = 11 : i64} {
  func.func @mlp_kernel(%arg0: i32, %arg1: memref<8x32xf32, #tpu.memory_space<vmem>>, %arg2: memref<32x64xf32, #tpu.memory_space<vmem>>, %arg3: memref<1x64xf32, #tpu.memory_space<vmem>>, %arg4: memref<64x64xf32, #tpu.memory_space<vmem>>, %arg5: memref<1x64xf32, #tpu.memory_space<vmem>>, %arg6: memref<64x4xf32, #tpu.memory_space<vmem>>, %arg7: memref<1x4xf32, #tpu.memory_space<vmem>>, %arg8: memref<8x4xf32, #tpu.memory_space<vmem>>) attributes {dimension_semantics = [#tpu.dimension_semantics<parallel>], iteration_bounds = array<i64: 1>, scalar_prefetch = 0 : i64, scratch_operands = 0 : i64, tpu.core_type = #tpu.core_type<tc>, window_params = [{transform_indices = @transform_0, window_bounds = array<i64: 8, 32>}, {pipeline_mode = #tpu.pipeline_mode<synchronous>, transform_indices = @transform_1, window_bounds = array<i64: 32, 64>}, {pipeline_mode = #tpu.pipeline_mode<synchronous>, transform_indices = @transform_2, window_bounds = array<i64: 1, 64>}, {pipeline_mode = #tpu.pipeline_mode<synchronous>, transform_indices = @transform_3, window_bounds = array<i64: 64, 64>}, {pipeline_mode = #tpu.pipeline_mode<synchronous>, transform_indices = @transform_4, window_bounds = array<i64: 1, 64>}, {pipeline_mode = #tpu.pipeline_mode<synchronous>, transform_indices = @transform_5, window_bounds = array<i64: 64, 4>}, {pipeline_mode = #tpu.pipeline_mode<synchronous>, transform_indices = @transform_6, window_bounds = array<i64: 1, 4>}, {transform_indices = @transform_7, window_bounds = array<i64: 8, 4>}]} {
    %c0 = arith.constant 0 : index
    %c0_0 = arith.constant 0 : index
    %0 = vector.load %arg1[%c0, %c0_0] : memref<8x32xf32, #tpu.memory_space<vmem>>, vector<8x32xf32>
    %c0_1 = arith.constant 0 : index
    %c0_2 = arith.constant 0 : index
    %1 = vector.load %arg2[%c0_1, %c0_2] : memref<32x64xf32, #tpu.memory_space<vmem>>, vector<32x64xf32>
    %cst = arith.constant dense<0.000000e+00> : vector<8x64xf32>
    %2 = tpu.matmul %0, %1, %cst {dimension_numbers = #tpu.dot_dimension_numbers<[1], [0], [0], [1], [0, 0, 1, 1], [], []>} : vector<8x32xf32>, vector<32x64xf32>, vector<8x64xf32> -> vector<8x64xf32>
    %c0_3 = arith.constant 0 : index
    %c0_4 = arith.constant 0 : index
    %3 = vector.load %arg3[%c0_3, %c0_4] : memref<1x64xf32, #tpu.memory_space<vmem>>, vector<1x64xf32>
    %4 = vector.broadcast %3 : vector<1x64xf32> to vector<8x64xf32>
    %5 = arith.addf %2, %4 : vector<8x64xf32>
    %cst_5 = arith.constant 0.000000e+00 : f32
    %6 = vector.broadcast %cst_5 : f32 to vector<8x64xf32>
    %7 = arith.maximumf %5, %6 : vector<8x64xf32>
    %c0_6 = arith.constant 0 : index
    %c0_7 = arith.constant 0 : index
    %8 = vector.load %arg4[%c0_6, %c0_7] : memref<64x64xf32, #tpu.memory_space<vmem>>, vector<64x64xf32>
    %cst_8 = arith.constant dense<0.000000e+00> : vector<8x64xf32>
    %9 = tpu.matmul %7, %8, %cst_8 {dimension_numbers = #tpu.dot_dimension_numbers<[1], [0], [0], [1], [0, 0, 1, 1], [], []>} : vector<8x64xf32>, vector<64x64xf32>, vector<8x64xf32> -> vector<8x64xf32>
    %c0_9 = arith.constant 0 : index
    %c0_10 = arith.constant 0 : index
    %10 = vector.load %arg5[%c0_9, %c0_10] : memref<1x64xf32, #tpu.memory_space<vmem>>, vector<1x64xf32>
    %11 = vector.broadcast %10 : vector<1x64xf32> to vector<8x64xf32>
    %12 = arith.addf %9, %11 : vector<8x64xf32>
    %cst_11 = arith.constant 0.000000e+00 : f32
    %13 = vector.broadcast %cst_11 : f32 to vector<8x64xf32>
    %14 = arith.maximumf %12, %13 : vector<8x64xf32>
    %c0_12 = arith.constant 0 : index
    %c0_13 = arith.constant 0 : index
    %15 = vector.load %arg6[%c0_12, %c0_13] : memref<64x4xf32, #tpu.memory_space<vmem>>, vector<64x4xf32>
    %cst_14 = arith.constant dense<0.000000e+00> : vector<8x4xf32>
    %16 = tpu.matmul %14, %15, %cst_14 {dimension_numbers = #tpu.dot_dimension_numbers<[1], [0], [0], [1], [0, 0, 1, 1], [], []>} : vector<8x64xf32>, vector<64x4xf32>, vector<8x4xf32> -> vector<8x4xf32>
    %c0_15 = arith.constant 0 : index
    %c0_16 = arith.constant 0 : index
    %17 = vector.load %arg7[%c0_15, %c0_16] : memref<1x4xf32, #tpu.memory_space<vmem>>, vector<1x4xf32>
    %18 = vector.broadcast %17 : vector<1x4xf32> to vector<8x4xf32>
    %19 = arith.addf %16, %18 : vector<8x4xf32>
    %20 = math.tanh %19 : vector<8x4xf32>
    %c0_17 = arith.constant 0 : index
    %c0_18 = arith.constant 0 : index
    %21 = vector.load %arg8[%c0_17, %c0_18] : memref<8x4xf32, #tpu.memory_space<vmem>>, vector<8x4xf32>
    tpu.vector_store %arg8[%c0_17, %c0_18], %20 {strides = array<i32>} : memref<8x4xf32, #tpu.memory_space<vmem>>, vector<8x4xf32>,
    return
  }
  func.func @transform_0(%arg0: i32) -> (i32, i32) {
    %c0_i32 = arith.constant 0 : i32
    %c0_i32_0 = arith.constant 0 : i32
    return %arg0, %c0_i32 : i32, i32
  }
  func.func @transform_1(%arg0: i32) -> (i32, i32) {
    %c0_i32 = arith.constant 0 : i32
    %c0_i32_0 = arith.constant 0 : i32
    %c0_i32_1 = arith.constant 0 : i32
    return %c0_i32, %c0_i32_0 : i32, i32
  }
  func.func @transform_2(%arg0: i32) -> (i32, i32) {
    %c0_i32 = arith.constant 0 : i32
    %c0_i32_0 = arith.constant 0 : i32
    %c0_i32_1 = arith.constant 0 : i32
    return %c0_i32, %c0_i32_0 : i32, i32
  }
  func.func @transform_3(%arg0: i32) -> (i32, i32) {
    %c0_i32 = arith.constant 0 : i32
    %c0_i32_0 = arith.constant 0 : i32
    %c0_i32_1 = arith.constant 0 : i32
    return %c0_i32, %c0_i32_0 : i32, i32
  }
  func.func @transform_4(%arg0: i32) -> (i32, i32) {
    %c0_i32 = arith.constant 0 : i32
    %c0_i32_0 = arith.constant 0 : i32
    %c0_i32_1 = arith.constant 0 : i32
    return %c0_i32, %c0_i32_0 : i32, i32
  }
  func.func @transform_5(%arg0: i32) -> (i32, i32) {
    %c0_i32 = arith.constant 0 : i32
    %c0_i32_0 = arith.constant 0 : i32
    %c0_i32_1 = arith.constant 0 : i32
    return %c0_i32, %c0_i32_0 : i32, i32
  }
  func.func @transform_6(%arg0: i32) -> (i32, i32) {
    %c0_i32 = arith.constant 0 : i32
    %c0_i32_0 = arith.constant 0 : i32
    %c0_i32_1 = arith.constant 0 : i32
    return %c0_i32, %c0_i32_0 : i32, i32
  }
  func.func @transform_7(%arg0: i32) -> (i32, i32) {
    %c0_i32 = arith.constant 0 : i32
    %c0_i32_0 = arith.constant 0 : i32
    return %arg0, %c0_i32 : i32, i32
  }
}

</mosaic_0001>

<bundles_post_ra>
// kernel: tpu_custom_call.1
= control target key start
LH: loop header
LB: loop body
LE: loop exit
PB: predicated region body
PF: predicated region fallthrough
CT: control target
= control target key end

     0   :  { %12 = vsyncpa [#allocation3], 0  ;;  %s453_s24 = smov [#allocation2]   ;;  %s577_s0 = inlined_call_operand.vmem [shape: f32[8,32], index: 0, kind: input, shape index: {}]   ;;  %s578_s1 = inlined_call_operand.hbm [shape: f32[32,64], index: 1, kind: input, shape index: {}]   ;;  %s579_s2 = inlined_call_operand.vmem [shape: f32[1,64], index: 2, kind: input, shape index: {}]   ;;  %s580_s3 = inlined_call_operand.vmem [shape: f32[64,64], index: 3, kind: input, shape index: {}]   ;;  %s581_s4 = inlined_call_operand.vmem [shape: f32[1,64], index: 4, kind: input, shape index: {}]   ;;  %s582_s5 = inlined_call_operand.vmem [shape: f32[64,4], index: 5, kind: input, shape index: {}]   ;;  %s583_s6 = inlined_call_operand.vmem [shape: f32[1,4], index: 6, kind: input, shape index: {}]   ;;  %s584_s7 = inlined_call_operand.vmem [shape: f32[8,4], index: 7, kind: output, shape index: {}]  }
   0x1   :  { %s20_s25 = sshll.u32 %s453_s24, 4  ;;  %s429_s28 = scalar_lea.hbm %s578_s1, 512  ;;  %s21_s25 = int_to_ptr.vmem [resolvable:$true] %s20_s25 }
   0x2   :  { %p430_p0 = scmp.ne.s32.totalorder %s578_s1, %s429_s28  ;;  %p433_p1 = scmp.lt.u32.totalorder %s429_s28, %s578_s1 }
   0x4   :  { %p435_p2 = pnand %p433_p1, %p430_p0 }
   0x6   :  { %438 = shalt.err (!%p435_p2)
}
   0x7   :  { %s439_s10 = scalar_lea.vmem %s21_s25, 512  ;;  %p444_p4 = scmp.lt.s32.totalorder %s21_s25, %s21_s25 }
   0x8   :  { %p440_p3 = scmp.ne.s32.totalorder %s21_s25, %s439_s10  ;;  %p445_p5 = scmp.lt.s32.totalorder %s439_s10, %s439_s10 }
   0xa   :  { %p446_p6 = por %p445_p5, %p444_p4 }
   0xc   :  { %p447_p7 = pnand %p446_p6, %p440_p3 }
   0xe   :  { %450 = shalt.err (!%p447_p7)
}
   0xf   :  { %s454_s11 = smov 128   ;;  %s455_s12 = smov 8  }
  0x10   :  { %26 = dma.hbm_to_vmem [thread:$0]  %s578_s1, 512, %s21_s25, [#allocation3], %s454_s11, %s454_s11, %s455_s12  }
  0x11   :  { %451 = dma.done.wait [#allocation3], 512  }
  0x12   :  { %452 = vsyncadd [#allocation3], 4294966784  ;;  %v456_v0 = vmov 0.0|0.0   ;;  %vm457_vm0 = vmmov 0   ;;  %v458_v1 = vmov 0.0   ;;  %v41_v2 = vld [vmem:[#allocation2] sm:$0xff] }
  0x13   :  { %391 = vmatprep.subr.bf16.mxu0 %v456_v0  ;;  %350 = vmatprep.mubr.msk.f32.mxu0 %vm457_vm0, %v458_v1  ;;  %v42_v3 = vld [vmem:[#allocation2 + $0x8] sm:$0xff]  ;;  %v43_v4 = vld [vmem:[#allocation2 + $0x10] sm:$0xff]  ;;  %v44_v6 = vld [vmem:[#allocation2 + $0x18] sm:$0xff]  ;;  %vm52_vm1 = vcmask 261120   ;;  %vm142_vm2 = vcmask 523264   ;;  %vm306_vm3 = vcmask 31744  }
  0x14   :  { %397 = vmatprep.subr.bf16.mxu1 %v456_v0  ;;  %369 = vmatprep.mubr.msk.f32.mxu1 %vm457_vm0, %v458_v1  ;;  %v392_v5 = vpack.c.bf16 %v42_v3, %v41_v2  ;;  %v127_v7 = vld [vmem:[%s580_s3] sm:$0xff]  ;;  %v128_v8 = vld [vmem:[%s580_s3 + $0x8] sm:$0xff]  ;;  %v129_v9 = vld [vmem:[%s580_s3 + $0x10] sm:$0xff]  ;;  %v395_v11 = vpack.c.bf16 %v44_v6, %v43_v4 }
  0x15   :  { %v130_v10 = vld [vmem:[%s580_s3 + $0x18] sm:$0xff]  ;;  %v398_v12 = vpack.c.bf16 %v128_v8, %v127_v7  ;;  %v131_v14 = vld [vmem:[%s580_s3 + $0x20] sm:$0xff]  ;;  %v132_v15 = vld [vmem:[%s580_s3 + $0x28] sm:$0xff] }
  0x16   :  { %393 = vmatpush3.bf16.msra.mxu0 %v392_v5  ;;  %v401_v13 = vpack.c.bf16 %v130_v10, %v129_v9  ;;  %v40_v16 = vld [vmem:[%s577_s0] sm:$0xff]  ;;  %v404_v17 = vpack.c.bf16 %v132_v15, %v131_v14  ;;  %v133_v18 = vld [vmem:[%s580_s3 + $0x30] sm:$0xff]  ;;  %v134_v19 = vld [vmem:[%s580_s3 + $0x38] sm:$0xff] }
  0x17   :  { %394 = vmatprep.subr.bf16.mxu0 %v456_v0  ;;  %399 = vmatpush3.bf16.msra.mxu1 %v398_v12  ;;  %v407_v20 = vpack.c.bf16 %v134_v19, %v133_v18  ;;  %v217_v21 = vld [vmem:[%s582_s5] sm:$0xff]  ;;  %v218_v22 = vld [vmem:[%s582_s5 + $0x8] sm:$0xff]  ;;  %v219_v23 = vld [vmem:[%s582_s5 + $0x10] sm:$0xff] }
  0x18   :  { %400 = vmatprep.subr.bf16.mxu1 %v456_v0  ;;  %v410_v24 = vpack.c.bf16 %v218_v22, %v217_v21  ;;  %v220_v25 = vld [vmem:[%s582_s5 + $0x18] sm:$0xff]  ;;  %v221_v27 = vld [vmem:[%s582_s5 + $0x20] sm:$0xff]  ;;  %v222_v28 = vld [vmem:[%s582_s5 + $0x28] sm:$0xff] }
  0x19   :  { %v413_v26 = vpack.c.bf16 %v220_v25, %v219_v23  ;;  %v416_v29 = vpack.c.bf16 %v222_v28, %v221_v27  ;;  %v313_v30 = vld [vmem:[%s579_s2] ss:$0 sm:$0xff]  ;;  %v223_v35 = vld [vmem:[%s582_s5 + $0x30] sm:$0xff]  ;;  %v224_v36 = vld [vmem:[%s582_s5 + $0x38] sm:$0xff] }
  0x1a   :  { %396 = vmatpush3.bf16.msra.mxu0 %v395_v11  ;;  %v419_v37 = vpack.c.bf16 %v224_v36, %v223_v35  ;;  %v315_v38 = vld [vmem:[%s581_s4] ss:$0 sm:$0xff] }
  0x1b   :  { %409 = vmatprep.subr.bf16.mxu0 %v456_v0  ;;  %402 = vmatpush3.bf16.msra.mxu1 %v401_v13  ;;  %v317_v43 = vld [vmem:[%s583_s6] ss:$0 sm:$0xff] }
  0x1c   :  { %403 = vmatprep.subr.bf16.mxu1 %v456_v0 }
  0x1d   :  { %351 = vmatmul.mubr.msk.f32.vlgmr.msra.gmra.mrb[0].mxu0 %vm52_vm1, %v40_v16 }
  0x1e   :  { %388 = vmatprep.mubr.msk.f32.mxu0 %vm457_vm0, %v458_v1  ;;  %411 = vmatpush3.bf16.msra.mxu0 %v410_v24 }
  0x1f   :  { %405 = vmatpush3.bf16.msra.mxu1 %v404_v17  ;;  %412 = vmatprep.subr.bf16.mxu0 %v456_v0 }
  0x20   :  { %406 = vmatprep.subr.bf16.mxu1 %v456_v0 }
  0x22   :  { %414 = vmatpush3.bf16.msra.mxu0 %v413_v26 }
  0x23   :  { %408 = vmatpush3.bf16.msra.mxu1 %v407_v20  ;;  %415 = vmatprep.subr.bf16.mxu0 %v456_v0 }
  0x26   :  { %417 = vmatpush3.bf16.msra.mxu0 %v416_v29 }
  0x27   :  { %418 = vmatprep.subr.bf16.mxu0 %v456_v0 }
  0x2a   :  { %420 = vmatpush3.bf16.msra.mxu0 %v419_v37 }
  0xf0   :  { %v122_v31 = vpop.f32.mrb[0].mxu0 }
  0xf1   :  { %v123_v32 = vadd.f32 %v313_v30, %v122_v31  ;;  %v352_v33 = vpop.f32.mrb[1].mxu0 }
  0xf3   :  { %v126_v34 = vmax.f32 %v123_v32, 0.0 }
  0xf5   :  { %370 = vmatmul.mubr.msk.f32.vlgmr.msra.gmra.mrb[0].mxu1 %vm142_vm2, %v126_v34 }
 0x1c8   :  { %v212_v39 = vpop.f32.mrb[0].mxu1 }
 0x1c9   :  { %v213_v40 = vadd.f32 %v315_v38, %v212_v39  ;;  %v371_v41 = vpop.f32.mrb[1].mxu1 }
 0x1cb   :  { %v216_v42 = vmax.f32 %v213_v40, 0.0 }
 0x1cd   :  { %389 = vmatmul.mubr.msk.f32.vlgmr.msra.gmra.mrb[2].mxu0 %vm142_vm2, %v216_v42 }
 0x2a0   :  { %v301_v44 = vpop.f32.mrb[2].mxu0 }
 0x2a1   :  { %v302_v45 = vadd.f32 %v317_v43, %v301_v44  ;;  %v390_v46 = vpop.f32.mrb[3].mxu0 }
 0x2a3   :  { %427 = vtanh.f32 %v302_v45 }
 0x2ad   :  { %v428_v47 = vpop.eup %427 }
 0x2ae   :  { %307 = vst.msk [vmem:[%s584_s7] sm:$0xff] %vm306_vm3, %v428_v47 }
 0x2af   :  { %312 = vsyncpa [#allocation3], 1 }

</bundles_post_ra>
